<compile_context>
chip_gen: v7x
topology: tpu7x:2x2x1
jax: 0.10.0
libtpu: 0.0.40
codegen_flags: <defaults>
</compile_context>

<pallas_src>
import functools

import jax
import jax.numpy as jnp
from jax import lax
from jax.experimental import pallas as pl
from jax.experimental.pallas import tpu as pltpu


def rmsnorm_kernel(x_ref, g_ref, o_ref, *, eps):
    # x_ref: (bb, C, lt)   g_ref: (C, 1) with sqrt(C) pre-folded   o_ref: (bb, C, lt)
    xf = x_ref[...].astype(jnp.float32)              # f32 accumulation (no-op for f32)
    # Sum of squares over channels (sublane axis) -> (bb, 1, lt); XLU reduce.
    ss = jnp.sum(xf * xf, axis=1, keepdims=True)
    # 1 / max(||x||_2, eps) == rsqrt(max(ss, eps^2)); rsqrt runs on the EUP.
    inv = lax.rsqrt(jnp.maximum(ss, eps * eps))
    # Single fused scale pass; g_ref already carries the sqrt(C) factor.
    o_ref[...] = (xf * inv * g_ref[...]).astype(o_ref.dtype)


def _round_up(n, m):
    return ((n + m - 1) // m) * m


def rmsnorm_forward(x, g, *, eps=1e-12):
    """x: (B, C, L) NCL.  g: learned scale, any shape reshapable to (C,)."""
    B, C, L = x.shape
    itemsize = jnp.dtype(x.dtype).itemsize

    # Fold sqrt(C) into g once here (C-element array -> negligible wrapper cost;
    # this is not the "pre-scale the big input" anti-pattern).
    g2 = jnp.reshape(g, (C, 1)).astype(jnp.float32) * (float(C) ** 0.5)

    # ---- generation-dependent VMEM budget -----------------------------------
    try:
        vmem_cap = int(pltpu.get_tpu_info().vmem_capacity_bytes)
    except Exception:
        vmem_cap = 64 << 20  # conservative (v7x-sized) fallback
    small_vmem = vmem_cap <= (64 << 20)            # v7x: 64 MiB per TensorCore
    in_tile_budget = (2 << 20) if small_vmem else (8 << 20)

    # ---- tiling --------------------------------------------------------------
    # Length tile: fixed multiple of 128; ragged edge handled by a cdiv grid
    # (never falls back to a giant full-L tile).
    lt_cap = 1024 if small_vmem else 2048
    lt = min(_round_up(L, 128), lt_cap)
    # Batch tile: as many batches as fit the input-tile budget.
    bb = max(1, min(B, in_tile_budget // max(1, C * lt * itemsize)))

    # Guarantee >= 4 grid steps when there is enough work: >= 2 steps per v7x
    # TensorCore keeps each core's DMA double-buffering busy; near-free on
    # single-TC v5e/v6e.  Also splits L when B == 1.
    def n_steps(bb_, lt_):
        return pl.cdiv(B, bb_) * pl.cdiv(L, lt_)

    while n_steps(bb, lt) < 4 and bb > 1:
        bb = max(1, bb // 2)
    while n_steps(bb, lt) < 4 and lt > 128:
        lt = max(128, _round_up(lt // 2, 128))

    grid = (pl.cdiv(B, bb), pl.cdiv(L, lt))

    # ---- VMEM limit: derived from actual need, capped well below physical ----
    tile_bytes = bb * C * lt * itemsize
    f32_tile = bb * C * lt * 4
    need = 2 * 2 * tile_bytes + 3 * f32_tile + (2 << 20)  # dbl-buf in+out, temps, slack
    vmem_limit = int(min(max(need, 16 << 20), vmem_cap // 2))

    kernel = functools.partial(rmsnorm_kernel, eps=float(eps))

    cost = pl.CostEstimate(
        flops=5 * B * C * L,                # square, reduce-add, 2 scale muls, max
        transcendentals=B * L,              # one rsqrt per (b, l) column
        bytes_accessed=2 * B * C * L * itemsize + C * 4,
    )

    return pl.pallas_call(
        kernel,
        out_shape=jax.ShapeDtypeStruct((B, C, L), x.dtype),
        grid_spec=pltpu.PrefetchScalarGridSpec(
            num_scalar_prefetch=0,
            grid=grid,
            in_specs=[
                # x: (bb, C, lt) tile; channel axis never split (reduction in-tile).
                pl.BlockSpec((bb, C, lt), lambda i, j: (i, 0, j)),
                # g: tiny resident (C, 1) block, same for every grid step.
                pl.BlockSpec((C, 1), lambda i, j: (0, 0)),
            ],
            out_specs=pl.BlockSpec((bb, C, lt), lambda i, j: (i, 0, j)),
        ),
        compiler_params=pltpu.CompilerParams(
            dimension_semantics=("parallel", "parallel"),
            vmem_limit_bytes=vmem_limit,
        ),
        cost_estimate=cost,
    )(x, g2)


def rmsnorm_reference(x, g, eps=1e-12):
    # Pure-JAX reference matching F.normalize(x, dim=1) * g * sqrt(C).
    C = x.shape[1]
    xf = x.astype(jnp.float32)
    norm = jnp.sqrt(jnp.sum(xf * xf, axis=1, keepdims=True))
    normalized = xf / jnp.maximum(norm, eps)
    out = normalized * jnp.reshape(g, (1, C, 1)).astype(jnp.float32) * (C ** 0.5)
    return out.astype(x.dtype)


if __name__ == "__main__":
    key = jax.random.PRNGKey(0)
    k_x, k_g = jax.random.split(key, 2)

    B, C, L = 4, 8, 256  # batch, channels, sequence length (NCL)
    x = jax.random.normal(k_x, (B, C, L), dtype=jnp.float32)
    # Module initializes g = ones(1, dim, 1); perturb slightly so the learned
    # scale path is actually exercised.
    g = jnp.ones((1, C, 1), dtype=jnp.float32) + 0.1 * jax.random.normal(
        k_g, (1, C, 1), dtype=jnp.float32
    )

    out = rmsnorm_forward(x, g)
    out = jax.block_until_ready(out)

    ref = rmsnorm_reference(x, g)
    assert out.shape == (B, C, L)
    assert out.dtype == x.dtype
    assert jnp.allclose(out, ref, atol=1e-5, rtol=1e-5), "mismatch vs reference"

    print("KERNEL_OK")
</pallas_src>

<mosaic_0001>
module attributes {stable_mosaic.version = 11 : i64} {
  func.func @rmsnorm_kernel(%arg0: i32, %arg1: i32, %arg2: memref<1x8x256xf32, #tpu.memory_space<vmem>>, %arg3: memref<8x1xf32, #tpu.memory_space<vmem>>, %arg4: memref<1x8x256xf32, #tpu.memory_space<vmem>>) attributes {dimension_semantics = [#tpu.dimension_semantics<parallel>, #tpu.dimension_semantics<parallel>], iteration_bounds = array<i64: 4, 1>, scalar_prefetch = 0 : i64, scratch_operands = 0 : i64, tpu.core_type = #tpu.core_type<tc>, window_params = [{transform_indices = @transform_0, window_bounds = array<i64: 1, 8, 256>}, {pipeline_mode = #tpu.pipeline_mode<synchronous>, transform_indices = @transform_1, window_bounds = array<i64: 8, 1>}, {transform_indices = @transform_2, window_bounds = array<i64: 1, 8, 256>}]} {
    %c0 = arith.constant 0 : index
    %c0_0 = arith.constant 0 : index
    %c0_1 = arith.constant 0 : index
    %0 = vector.load %arg2[%c0, %c0_0, %c0_1] : memref<1x8x256xf32, #tpu.memory_space<vmem>>, vector<1x8x256xf32>
    %1 = arith.mulf %0, %0 : vector<1x8x256xf32>
    %cst = arith.constant dense<0.000000e+00> : vector<1x256xf32>
    %2 = vector.multi_reduction <add>, %1, %cst [1] : vector<1x8x256xf32> to vector<1x256xf32>
    %3 = vector.shape_cast %2 : vector<1x256xf32> to vector<1x1x256xf32>
    %cst_2 = arith.constant 1.000000e-24 : f32
    %4 = vector.broadcast %cst_2 : f32 to vector<1x1x256xf32>
    %5 = arith.maximumf %3, %4 : vector<1x1x256xf32>
    %6 = math.rsqrt %5 : vector<1x1x256xf32>
    %7 = vector.broadcast %6 : vector<1x1x256xf32> to vector<1x8x256xf32>
    %8 = arith.mulf %0, %7 : vector<1x8x256xf32>
    %c0_3 = arith.constant 0 : index
    %c0_4 = arith.constant 0 : index
    %9 = vector.load %arg3[%c0_3, %c0_4] : memref<8x1xf32, #tpu.memory_space<vmem>>, vector<8x1xf32>
    %10 = vector.shape_cast %9 : vector<8x1xf32> to vector<1x8x1xf32>
    %11 = vector.broadcast %10 : vector<1x8x1xf32> to vector<1x8x256xf32>
    %12 = arith.mulf %8, %11 : vector<1x8x256xf32>
    %c0_5 = arith.constant 0 : index
    %c0_6 = arith.constant 0 : index
    %c0_7 = arith.constant 0 : index
    %13 = vector.load %arg4[%c0_5, %c0_6, %c0_7] : memref<1x8x256xf32, #tpu.memory_space<vmem>>, vector<1x8x256xf32>
    tpu.vector_store %arg4[%c0_5, %c0_6, %c0_7], %12 {strides = array<i32>} : memref<1x8x256xf32, #tpu.memory_space<vmem>>, vector<1x8x256xf32>,
    return
  }
  func.func @transform_0(%arg0: i32, %arg1: i32) -> (i32, i32, i32) {
    %c0_i32 = arith.constant 0 : i32
    %c0_i32_0 = arith.constant 0 : i32
    return %arg0, %c0_i32, %arg1 : i32, i32, i32
  }
  func.func @transform_1(%arg0: i32, %arg1: i32) -> (i32, i32) {
    %c0_i32 = arith.constant 0 : i32
    %c0_i32_0 = arith.constant 0 : i32
    %c0_i32_1 = arith.constant 0 : i32
    return %c0_i32, %c0_i32_0 : i32, i32
  }
  func.func @transform_2(%arg0: i32, %arg1: i32) -> (i32, i32, i32) {
    %c0_i32 = arith.constant 0 : i32
    %c0_i32_0 = arith.constant 0 : i32
    return %arg0, %c0_i32, %arg1 : i32, i32, i32
  }
}

</mosaic_0001>

<bundles_post_ra>
// kernel: tpu_custom_call.1
= control target key start
LH: loop header
LB: loop body
LE: loop exit
PB: predicated region body
PF: predicated region fallthrough
CT: control target
= control target key end

     0   :  { %7 = vsyncpa [#allocation3], 0  ;;  %s707_s0 = inlined_call_operand.hbm [shape: f32[4,8,256], index: 0, kind: input, shape index: {}]   ;;  %s708_s1 = inlined_call_operand.vmem [shape: f32[8,1], index: 1, kind: input, shape index: {}]   ;;  %s709_s2 = inlined_call_operand.hbm [shape: f32[4,8,256], index: 2, kind: output, shape index: {}]  }
   0x1   :  { %9 = vsyncpa [#allocation3 + $0x1], 0 }
   0x2   :  { %10 = vsyncpa [#allocation4], 0 }
   0x3   :  { %12 = vsyncpa [#allocation4 + $0x1], 0  ;;  %s530_s9 = smov 0   ;;  %s532_s10 = smov 0  }
   0x4   :  { %s534_s11 = smov 0   ;;  %s536_s12 = smov 0  }
   0x5   :  { %s538_s13 = smov 0   ;;  %s540_s14 = smov 0  }
   0x6 LB: > { %s313_s15 = sadd.s32 4294967295, %s510_s14   ;;  %s314_s16 = sadd.s32 4294967294, %s510_s14   ;;  %s510_s14 = sphi %s540_s14, %s18_s14   ;;  %s506_s13 = sphi %s538_s13, %s724_s13   ;;  %s502_s12 = sphi %s536_s12, %s723_s12   ;;  %s498_s11 = sphi %s534_s11, %s722_s11   ;;  %s494_s10 = sphi %s532_s10, %s721_s10   ;;  %s490_s9 = sphi %s530_s9, %s720_s9  }
   0x7   : > { %s30_s17 = sadd.s32 1, %s506_s13  ;;  %s39_s18 = sadd.s32 1, %s498_s11 }
   0x8   : > { %p32_p0 = scmp.ge.s32.totalorder %s30_s17, 4  ;;  %p46_p1 = scmp.ne.s32.totalorder %s498_s11, %s494_s10 }
   0x9   : > { %p47_p2 = scmp.eq.s32.totalorder %s510_s14, 0  ;;  %p52_p3 = scmp.ne.s32.totalorder %s494_s10, %s490_s9 }
   0xa   : > { %s726_s17 = smov (%p32_p0, %s30_s17), 0  ;;  %p53_p5 = scmp.eq.s32.totalorder %s313_s15, 0 }
   0xb   : > { %p571_p4 = por %p47_p2, %p46_p1  ;;  %s34_s20 = ssub.s32 %s506_s13, %s726_s17 }
   0xc   : > { %p99_p6 = scmp.eq.s32.totalorder %s313_s15, 3  ;;  %p37_p7 = scmp.eq.s32.totalorder %s34_s20, 0 }
   0xd   : > { %p577_p8 = por %p53_p5, %p52_p3  ;;  %p105_p10 = scmp.eq.s32.totalorder %s314_s16, 3 }
   0xe   : > { %p581_p9 = por %p99_p6, %p46_p1  ;;  %p342_p12 = scmp.lt.s32.totalorder %s510_s14, 4 }
   0xf   : > { %s586_s23 = scalar_select %p37_p7, %s498_s11, %s39_s18  }
  0x10   : > { %s713_s22 = scalar_select %p581_p9, 1, 0 }
  0x11   : > { %p588_p11 = por %p105_p10, %p52_p3  ;;  %s128_s25 = sand.u32 1, %s498_s11  }
  0x12   : > { %s317_s26 = sshll.u32 %s128_s25, 4  ;;  %s328_s27 = sshll.u32 %s506_s13, 8 }
  0x13   : > { %s714_s24 = scalar_select %p588_p11, 1, 0 }
  0x14   : > { %s598_s30 = scalar_lea.hbm %s707_s0, %s328_s27  ;;  %s132_s3 = scalar_lea.vmem [#allocation2], %s317_s26 }
  0x15   : > { %s142_s4 = sshll.u32 %s132_s3, 4  ;;  %p604_p13 = pnand %p342_p12, %p571_p4  ;;  %s600_s4 = int_to_ptr.vmem [resolvable:$true] %s142_s4 }
  0x16   : > { %s129_s6 = scalar_lea.sflag [#allocation3], %s128_s25  ;;  %s398_s7 = scalar_lea.hbm %s598_s30, 256 }
  0x17   : > { %p399_p2 = scmp.ne.s32.totalorder %s598_s30, %s398_s7  ;;  %p400_p3 = pneg %p604_p13 }
  0x18   : > { %s403_s16 = scalar_lea.hbm %s707_s0, 1024  ;;  %p404_p4 = scmp.lt.u32.totalorder %s598_s30, %s707_s0 }
  0x19   : > { %p401_p5 = pnand %p400_p3, %p399_p2  ;;  %p405_p7 = scmp.lt.u32.totalorder %s403_s16, %s398_s7 }
  0x1a   : > { %p407_p12 = scmp.lt.u32.totalorder %s398_s7, %s598_s30 }
  0x1b   : > { %p402_p6 = pneg %p401_p5  ;;  %p406_p10 = por %p405_p7, %p404_p4 }
  0x1d   : > { %p408_p0 = por %p407_p12, %p406_p10 }
  0x1f   : > { %p409_p1 = pnand %p408_p0, %p402_p6 }
  0x21   : > { %412 = shalt.err (!%p409_p1)
}
  0x22   : > { %s413_s20 = scalar_lea.vmem %s600_s4, 256  ;;  %s512_s25 = smov [#allocation2]  }
  0x23   : > { %p414_p2 = scmp.ne.s32.totalorder %s600_s4, %s413_s20  ;;  %s418_s26 = sshll.u32 %s512_s25, 4  ;;  %s419_s26 = int_to_ptr.vmem [resolvable:$false] %s418_s26 }
  0x24   : > { %s420_s27 = scalar_lea.vmem %s419_s26, 512  ;;  %p421_p9 = scmp.lt.s32.totalorder %s600_s4, %s419_s26 }
  0x25   : > { %p416_p5 = pnand %p414_p2, %p400_p3  ;;  %p422_p4 = scmp.lt.s32.totalorder %s420_s27, %s413_s20 }
  0x27   : > { %p417_p11 = pneg %p416_p5  ;;  %p423_p7 = por %p422_p4, %p421_p9 }
  0x29   : > { %p424_p10 = pnand %p423_p7, %p417_p11 }
  0x2b   : > { %427 = shalt.err (!%p424_p10)
}
  0x2c   : > { %337 = dma.hbm_to_vmem [thread:$0]  (!%p604_p13), %s598_s30, 256, %s600_s4, %s129_s6  }
  0x2d   : > { %p716_p0 = scmp.lt.s32.totalorder %s510_s14, 5  ;;  %p717_p1 = scmp.ge.s32.totalorder %s510_s14, 1 }
  0x2f   : > { %p148_p3 = pnand %p717_p1, %p716_p0 }
  0x30   : > { %s640_s28 = sand.u32 (!%p148_p3), 1, %s494_s10  }
  0x31   : > { %151 = sbr.rel (%p148_p3) target bundleno = 203 (0xcb), region = 28  ;;  %s321_s29 = sshll.u32 (!%p148_p3), %s640_s28, 4 }
  0x32   : > { %s154_s3 = scalar_lea.sflag (!%p148_p3), [#allocation3], %s640_s28  ;;  %s157_s5 = scalar_lea.vmem (!%p148_p3), [#allocation2], %s321_s29 }
  0x38   : > { %481 = dma.done.wait (%p577_p8), %s154_s3, 256  }
  0x39   : > { %483 = vsyncadd (%p577_p8), %s154_s3, 4294967040  ;;  %v513_v0 = vmov 0   ;;  %v202_v1 = vld [vmem:[%s708_s1] sm:$0xff]  ;;  %v181_v3 = vld [vmem:[%s157_s5 + $0x8] sm:$0xff]  ;;  %s329_s21 = sshll.u32 %s502_s12, 8  ;;  %s177_s6 = scalar_lea.vmem [#allocation5], %s321_s29 }
  0x3a   : > { %393 = vset.pattern.permute.xlu0 %v513_v0  ;;  %v180_v2 = vld [vmem:[%s157_s5] sm:$0xff]  ;;  %v183_v5 = vmul.f32 %v181_v3, %v181_v3  ;;  %s229_s7 = sshll.u32 %s177_s6, 4  ;;  %s659_s16 = scalar_lea.hbm %s709_s2, %s329_s21  ;;  %s661_s7 = int_to_ptr.vmem [resolvable:$true] %s229_s7 }
  0x3b   : > { %205 = vperm.xlu0 %393, %v202_v1   ;;  %v182_v4 = vmul.f32 %v180_v2, %v180_v2  ;;  %s213_s18 = scalar_lea.sflag [#allocation4], %s640_s28  ;;  %s428_s12 = scalar_lea.vmem %s661_s7, 256 }
  0x3c   : > { %v190_v7 = vrot.slane %v183_v5, 4  ;;  %p429_p8 = scmp.ne.s32.totalorder %s661_s7, %s428_s12  ;;  %p718_p9 = scmp.ne.s32.totalorder %s713_s22, 0 }
  0x3d   : > { %v184_v6 = vrot.slane %v182_v4, 4  ;;  %s514_s19 = smov [#allocation5]  }
  0x3e   : > { %v191_v9 = vadd.f32 %v190_v7, %v183_v5  ;;  %p430_p11 = pnand %p429_p8, %p718_p9  ;;  %s432_s20 = sshll.u32 %s514_s19, 4  ;;  %s433_s20 = int_to_ptr.vmem [resolvable:$false] %s432_s20 }
  0x3f   : > { %v185_v8 = vadd.f32 %v184_v6, %v182_v4  ;;  %s434_s25 = scalar_lea.vmem %s433_s20, 512  ;;  %p435_p6 = scmp.lt.s32.totalorder %s661_s7, %s433_s20 }
  0x40   : > { %v192_v11 = vrot.slane %v191_v9, 2  ;;  %p431_p13 = pneg %p430_p11  ;;  %p436_p12 = scmp.lt.s32.totalorder %s434_s25, %s428_s12 }
  0x41   : > { %v186_v10 = vrot.slane %v185_v8, 2 }
  0x42   : > { %v193_v13 = vadd.f32 %v192_v11, %v191_v9  ;;  %p437_p2 = por %p436_p12, %p435_p6 }
  0x43   : > { %v187_v12 = vadd.f32 %v186_v10, %v185_v8 }
  0x44   : > { %v194_v15 = vrot.slane %v193_v13, 1  ;;  %p438_p5 = pnand %p437_p2, %p431_p13 }
  0x45   : > { %v188_v14 = vrot.slane %v187_v12, 1 }
  0x46   : > { %v195_v17 = vadd.f32 %v194_v15, %v193_v13 }
  0x47   : > { %v189_v16 = vadd.f32 %v188_v14, %v187_v12 }
  0x48   : > { %v197_v19 = vmax.f32 %v195_v17, 1e-24 }
  0x49   : > { %v196_v18 = vmax.f32 %v189_v16, 1e-24 }
  0x4b   : > { %394 = vrsqrt.f32 %v196_v18 }
  0x4c   : > { %396 = vrsqrt.f32 %v197_v19 }
  0x55   : > { %v395_v20 = vpop.eup %394 }
  0x56   : > { %v397_v21 = vpop.eup %396  ;;  %v200_v22 = vmul.f32 %v395_v20, %v180_v2 }
  0x57   : > { %v201_v23 = vmul.f32 %v397_v21, %v181_v3 }
  0xba   : > { %v206_v24 = vpop.permute.xlu0 %205 }
  0xbb   : > { %v208_v25 = vmul.f32 %v206_v24, %v200_v22  ;;  %v209_v26 = vmul.f32 %v206_v24, %v201_v23 }
  0xbd   : > { %210 = vst [vmem:[%s177_s6] sm:$0xff] %v208_v25  ;;  %211 = vst [vmem:[%s177_s6 + $0x8] sm:$0xff] %v209_v26 }
  0xbe   : > { %441 = shalt.err (!%p438_p5)
}
  0xbf   : > { %s442_s26 = scalar_lea.hbm %s659_s16, 256  ;;  %s446_s29 = scalar_lea.hbm %s709_s2, 1024 }
  0xc0   : > { %p443_p4 = scmp.ne.s32.totalorder %s659_s16, %s442_s26  ;;  %p447_p0 = scmp.lt.u32.totalorder %s659_s16, %s709_s2 }
  0xc1   : > { %p448_p1 = scmp.lt.u32.totalorder %s446_s29, %s442_s26  ;;  %p450_p8 = scmp.lt.u32.totalorder %s442_s26, %s659_s16 }
  0xc2   : > { %p444_p7 = pnand %p443_p4, %p718_p9 }
  0xc3   : > { %p449_p3 = por %p448_p1, %p447_p0 }
  0xc4   : > { %p445_p10 = pneg %p444_p7 }
  0xc5   : > { %p451_p11 = por %p450_p8, %p449_p3 }
  0xc7   : > { %p452_p13 = pnand %p451_p11, %p445_p10 }
  0xc9   : > { %455 = shalt.err (!%p452_p13)
}
  0xca   : > { %332 = dma.vmem_to_hbm [thread:$0]  (%p718_p9), %s661_s7, 256, %s659_s16, %s213_s18  }
  0xcb PF: > { %p343_p6 = scmp.ge.s32.totalorder %s510_s14, 2  ;;  %s241_s30 = sand.u32 1, %s490_s9  }
  0xcc   : > { %p719_p12 = scmp.ne.s32.totalorder %s714_s24, 0  ;;  %s242_s4 = scalar_lea.sflag [#allocation4], %s241_s30 }
  0xce   : > { %p339_p2 = pnand %p343_p6, %p719_p12 }
  0xd0   : > { %485 = dma.done.wait (!%p339_p2), %s242_s4, 256  }
  0xd1   : > { %487 = vsyncadd (!%p339_p2), %s242_s4, 4294967040  ;;  %s18_s14 = sadd.s32 1, %s510_s14   ;;  %s720_s9 = smov %s494_s10 }
  0xd2   : > { %p15_p5 = scmp.ge.s32.totalorder %s18_s14, 6   ;;  %s721_s10 = smov %s498_s11 }
  0xd3   : > { %s722_s11 = smov %s586_s23  ;;  %s723_s12 = smov %s506_s13 }
  0xd4   : > { %s724_s13 = smov %s726_s17  ;;  %17 = sbr.rel (!%p15_p5) target bundleno = 6 (0x6), region = 73 }
  0xdb   :  { %247 = vsyncpa [#allocation3], 1 }
  0xdc   :  { %249 = vsyncpa [#allocation3 + $0x1], 1 }
  0xdd   :  { %250 = vsyncpa [#allocation4], 1 }
  0xde   :  { %252 = vsyncpa [#allocation4 + $0x1], 1 }

</bundles_post_ra>
